<compile_context>
chip_gen: v6e
topology: v6e:2x2x1
jax: 0.10.0
libtpu: 0.0.40
codegen_flags: <defaults>
</compile_context>

<pallas_src>
import functools
import math

import numpy as np
import jax
import jax.numpy as jnp
from jax import lax
from jax.experimental import pallas as pl
from jax.experimental.pallas import tpu as pltpu


# ---------------------------------------------------------------------------
# separable ROIAlign bilinear weights (built once per box in the wrapper)
# ---------------------------------------------------------------------------
def _axis_weights(start, bin_size, dim, pooled, samples):
    """Per-box separable ROIAlign interpolation weights for one spatial axis.

    start, bin_size: (B,) f32.  Returns (B, pooled, dim) f32 so that
    pooled_axis = W @ feature_axis averages `samples` bilinear taps per output
    bin (torchvision/detectron2 ROIAlign semantics; 1/samples folded in).
    """
    P, S = pooled, samples
    ph = lax.broadcasted_iota(jnp.float32, (1, P, S), 1)
    it = lax.broadcasted_iota(jnp.float32, (1, P, S), 2)
    coord = start[:, None, None] + (ph + (it + 0.5) / S) * bin_size[:, None, None]
    dim_f = float(dim)
    valid = ((coord >= -1.0) & (coord <= dim_f)).astype(jnp.float32)
    c = jnp.maximum(coord, 0.0)
    low = jnp.floor(c)
    at_edge = low >= dim_f - 1.0
    low = jnp.where(at_edge, dim_f - 1.0, low)
    high = jnp.where(at_edge, low, low + 1.0)
    frac = jnp.where(at_edge, 0.0, c - low)
    w_low = (1.0 - frac) * valid
    w_high = frac * valid
    grid = lax.broadcasted_iota(jnp.int32, coord.shape + (dim,), 3)
    low_i = low.astype(jnp.int32)[..., None]
    high_i = high.astype(jnp.int32)[..., None]
    w = (w_low[..., None] * (grid == low_i).astype(jnp.float32)
         + w_high[..., None] * (grid == high_i).astype(jnp.float32))
    return w.sum(axis=2) * (1.0 / S)                       # (B, P, dim)


def _level_weights(boxes, scale, height, width, pooled, samples, aligned):
    boxes = boxes.astype(jnp.float32)
    offset = 0.5 if aligned else 0.0
    start_w = boxes[:, 0] * scale - offset
    start_h = boxes[:, 1] * scale - offset
    roi_w = boxes[:, 2] * scale - offset - start_w
    roi_h = boxes[:, 3] * scale - offset - start_h
    if not aligned:
        roi_w = jnp.maximum(roi_w, 1.0)
        roi_h = jnp.maximum(roi_h, 1.0)
    wy = _axis_weights(start_h, roi_h / pooled, height, pooled, samples)
    wx = _axis_weights(start_w, roi_w / pooled, width, pooled, samples)
    return wy, wx                                          # (B,P,H), (B,P,W)


# ---------------------------------------------------------------------------
# Pallas kernel: one (box, channel-tile) per grid step
# ---------------------------------------------------------------------------
def _roi_align_level_kernel(sel_ref, wy_ref, wx_ref, feat_ref, out_ref, *,
                            pooled, height, c_tile):
    del sel_ref                                  # only used by the index maps
    feat = feat_ref[0, 0]                        # (ct*H, W), native dtype
    wx = wx_ref[0].astype(feat.dtype)            # (P, W)
    wy = wy_ref[0]                               # (P, H) f32

    # W-axis contraction for all channels/rows at once:
    #   (ct*H, W) x (P, W)^T -> (ct*H, P), f32 accumulation on the MXU.
    s = lax.dot_general(feat, wx,
                        dimension_numbers=(((1,), (1,)), ((), ())),
                        preferred_element_type=jnp.float32)
    s = s.reshape(c_tile, height, pooled)        # (ct, H, P): clean sublane split

    # H-axis contraction, batched over the channel tile (single batched MXU op,
    # no per-channel Python loop): (ct, P, H) x (ct, H, P) -> (ct, P, P).
    wy_b = jnp.broadcast_to(wy[None], (c_tile,) + wy.shape)
    out = jnp.einsum("cph,chq->cpq", wy_b, s,
                     preferred_element_type=jnp.float32)
    out_ref[0] = out.astype(out_ref.dtype)


def _choose_c_tile(channels, height, width, itemsize, budget_bytes=28 << 20):
    """Largest channel tile whose double-buffered feature tile fits the budget."""
    tile = height * width * itemsize
    if 2 * channels * tile <= budget_bytes:
        return channels
    best = None
    for ct in range(128, channels, 128):         # tiled ct must be 128-aligned
        if channels % ct == 0 and 2 * ct * tile <= budget_bytes:
            best = ct
    if best is not None:
        return best
    for ct in range(128, channels, 128):
        if channels % ct == 0:
            return ct
    # TODO(synk): channels with no 128-multiple divisor cannot be tiled here;
    # fall back to full-channel tiles and rely on vmem_limit_bytes.
    return channels


def _roi_align_level_pallas(feat_nchw, boxes, batch_sel, *, scale, pooled,
                            samples, aligned):
    n, channels, height, width = feat_nchw.shape
    num_box = boxes.shape[0]
    p = pooled
    wy, wx = _level_weights(boxes, scale, height, width, p, samples, aligned)

    itemsize = jnp.dtype(feat_nchw.dtype).itemsize
    ct = _choose_c_tile(channels, height, width, itemsize)
    nct = channels // ct

    # Pad H to a sublane multiple so the in-kernel (ct*H, P) -> (ct, H, P)
    # reshape never splits inside an (8, 128) tile.  Pad rows carry zero weight.
    hpad = (-height) % 8
    hp = height + hpad
    feat = feat_nchw
    if hpad:
        feat = jnp.pad(feat, ((0, 0), (0, 0), (0, hpad), (0, 0)))
        wy = jnp.pad(wy, ((0, 0), (0, 0), (0, hpad)))
    feat = feat.reshape(n, nct, ct * hp, width)      # channel-tiled, row-major

    kernel = functools.partial(_roi_align_level_kernel, pooled=p, height=hp,
                               c_tile=ct)

    feat_tile = ct * hp * width * itemsize
    vmem_est = (2 * (feat_tile + p * (hp + width) * 4 + ct * p * p * itemsize)
                + 3 * ct * hp * p * 4 + (4 << 20))
    vmem_limit = int(min(max(vmem_est, 32 << 20), 80 << 20))

    return pl.pallas_call(
        kernel,
        out_shape=jax.ShapeDtypeStruct((num_box, channels, p, p),
                                       feat_nchw.dtype),
        grid_spec=pltpu.PrefetchScalarGridSpec(
            num_scalar_prefetch=1,                   # per-box batch index (SMEM)
            grid=(num_box, nct),
            in_specs=[
                # per-box separable weights (tiny, pipelined)
                pl.BlockSpec((1, p, hp), lambda i, c, sel: (i, 0, 0)),
                pl.BlockSpec((1, p, width), lambda i, c, sel: (i, 0, 0)),
                # data-dependent feature tile: (batch, channel-tile)
                pl.BlockSpec((1, 1, ct * hp, width),
                             lambda i, c, sel: (sel[i], c, 0, 0)),
            ],
            out_specs=pl.BlockSpec((1, ct, p, p),
                                   lambda i, c, sel: (i, c, 0, 0)),
        ),
        compiler_params=pltpu.CompilerParams(
            dimension_semantics=("parallel", "parallel"),
            vmem_limit_bytes=vmem_limit),
    )(batch_sel, wy, wx, feat)


def _roi_align_level_ref(feat_nchw, boxes, batch_sel, *, scale, pooled,
                         samples, aligned):
    """Pure-JAX reference (same weight math, plain einsums)."""
    _, _, height, width = feat_nchw.shape
    wy, wx = _level_weights(boxes, scale, height, width, pooled, samples,
                            aligned)
    feat_b = feat_nchw[batch_sel].astype(jnp.float32)        # (B, C, H, W)
    t = jnp.einsum("bchw,bqw->bchq", feat_b, wx)
    out = jnp.einsum("bph,bchq->bcpq", wy, t)
    return out.astype(feat_nchw.dtype)


# ---------------------------------------------------------------------------
# ROIPooler.forward equivalent
# ---------------------------------------------------------------------------
def _roi_pooler(x, box_lists, level_fn, *, output_size, scales, sampling_ratio,
                pooler_type="ROIAlignV2", canonical_box_size=224,
                canonical_level=4):
    assert pooler_type in ("ROIAlign", "ROIAlignV2"), pooler_type
    # TODO(synk): pooler_type='ROIPool' (max pooling) is not implemented here.
    aligned = pooler_type == "ROIAlignV2"
    if isinstance(output_size, (tuple, list)):
        assert output_size[0] == output_size[1], "only square output_size"
        pooled = int(output_size[0])
    else:
        pooled = int(output_size)
    samples = int(sampling_ratio)
    # TODO(synk): sampling_ratio <= 0 (adaptive ceil(roi/P) grid) is unsupported.
    assert samples > 0

    min_level = -math.log2(scales[0])
    max_level = -math.log2(scales[-1])
    assert (math.isclose(min_level, round(min_level))
            and math.isclose(max_level, round(max_level)))
    min_level, max_level = int(round(min_level)), int(round(max_level))
    assert len(scales) == max_level - min_level + 1
    assert 0 <= min_level <= max_level
    assert canonical_box_size > 0

    num_images, channels = x[0].shape[0], x[0].shape[1]
    dtype = x[0].dtype
    assert len(x) == len(scales)
    assert len(box_lists) == num_images

    num_boxes = sum(int(b.shape[0]) for b in box_lists)
    if num_boxes == 0:
        return jnp.zeros((0, channels, pooled, pooled), dtype=dtype)

    boxes = jnp.concatenate([b.astype(jnp.float32) for b in box_lists], axis=0)
    batch_idx = np.concatenate(
        [np.full((int(b.shape[0]),), i, dtype=np.int32)
         for i, b in enumerate(box_lists)])

    # assign_boxes_to_levels
    areas = (boxes[:, 2] - boxes[:, 0]) * (boxes[:, 3] - boxes[:, 1])
    sizes = jnp.sqrt(areas)
    lvl = jnp.floor(canonical_level + jnp.log2(sizes / canonical_box_size + 1e-8))
    lvl = jnp.clip(lvl, min_level, max_level).astype(jnp.int32) - min_level
    lvl_np = np.asarray(jax.device_get(lvl))   # host-side grouping, like torch

    output = jnp.zeros((num_boxes, channels, pooled, pooled), dtype=dtype)
    for level, scale in enumerate(scales):
        inds = np.nonzero(lvl_np == level)[0]
        if inds.size == 0:
            continue
        # sort by batch index so consecutive grid steps reuse the feature-tile DMA
        order = inds[np.argsort(batch_idx[inds], kind="stable")]
        out_l = level_fn(
            x[level], boxes[order], jnp.asarray(batch_idx[order]),
            scale=float(scale), pooled=pooled, samples=samples, aligned=aligned)
        output = output.at[jnp.asarray(order)].set(out_l.astype(dtype))
    return output


def roi_pooler_forward(x, box_lists, **cfg):
    return _roi_pooler(x, box_lists, _roi_align_level_pallas, **cfg)


def roi_pooler_reference(x, box_lists, **cfg):
    return _roi_pooler(x, box_lists, _roi_align_level_ref, **cfg)


if __name__ == "__main__":
    key = jax.random.PRNGKey(0)
    k0, k1 = jax.random.split(key)

    # small FPN-like pyramid: scales (1/4, 1/8) over a 64x64 "image"
    num_images, channels = 2, 8
    x = [jax.random.normal(k0, (num_images, channels, 16, 16), jnp.float32),
         jax.random.normal(k1, (num_images, channels, 8, 8), jnp.float32)]

    # boxes in image coordinates (x1, y1, x2, y2)
    boxes0 = jnp.array([[4.0, 6.0, 20.0, 22.0],
                        [0.0, 0.0, 60.0, 60.0],
                        [10.0, 30.0, 25.0, 50.0]], jnp.float32)
    boxes1 = jnp.array([[8.0, 8.0, 48.0, 40.0],
                        [2.0, 3.0, 14.0, 18.0]], jnp.float32)
    box_lists = [boxes0, boxes1]

    cfg = dict(output_size=4, scales=(0.25, 0.125), sampling_ratio=2,
               pooler_type="ROIAlignV2", canonical_box_size=16,
               canonical_level=2)

    out = jax.block_until_ready(roi_pooler_forward(x, box_lists, **cfg))
    assert out.shape == (5, channels, 4, 4) and out.dtype == jnp.float32

    ref = jax.block_until_ready(roi_pooler_reference(x, box_lists, **cfg))
    err = float(jnp.max(jnp.abs(out - ref)))
    assert jnp.allclose(out, ref, atol=2e-3, rtol=2e-3), err

    print("KERNEL_OK")
</pallas_src>

<mosaic_0001>
module attributes {stable_mosaic.version = 11 : i64} {
  func.func @_roi_align_level_kernel(%arg0: i32, %arg1: i32, %arg2: memref<3xi32, #tpu.memory_space<smem>>, %arg3: memref<1x4x16xf32, #tpu.memory_space<vmem>>, %arg4: memref<1x4x16xf32, #tpu.memory_space<vmem>>, %arg5: memref<1x1x128x16xf32, #tpu.memory_space<vmem>>, %arg6: memref<1x8x4x4xf32, #tpu.memory_space<vmem>>) attributes {dimension_semantics = [#tpu.dimension_semantics<parallel>, #tpu.dimension_semantics<parallel>], iteration_bounds = array<i64: 3, 1>, scalar_prefetch = 1 : i64, scratch_operands = 0 : i64, tpu.core_type = #tpu.core_type<tc>, window_params = [{transform_indices = @transform_0, window_bounds = array<i64: 1, 4, 16>}, {transform_indices = @transform_1, window_bounds = array<i64: 1, 4, 16>}, {transform_indices = @transform_2, window_bounds = array<i64: 1, 1, 128, 16>}, {transform_indices = @transform_3, window_bounds = array<i64: 1, 8, 4, 4>}]} {
    %c0 = arith.constant 0 : index
    %c0_0 = arith.constant 0 : index
    %c0_1 = arith.constant 0 : index
    %c0_2 = arith.constant 0 : index
    %0 = vector.load %arg5[%c0, %c0_0, %c0_1, %c0_2] : memref<1x1x128x16xf32, #tpu.memory_space<vmem>>, vector<1x1x128x16xf32>
    %1 = vector.shape_cast %0 : vector<1x1x128x16xf32> to vector<128x16xf32>
    %c0_3 = arith.constant 0 : index
    %c0_4 = arith.constant 0 : index
    %c0_5 = arith.constant 0 : index
    %2 = vector.load %arg4[%c0_3, %c0_4, %c0_5] : memref<1x4x16xf32, #tpu.memory_space<vmem>>, vector<1x4x16xf32>
    %3 = vector.shape_cast %2 : vector<1x4x16xf32> to vector<4x16xf32>
    %c0_6 = arith.constant 0 : index
    %c0_7 = arith.constant 0 : index
    %c0_8 = arith.constant 0 : index
    %4 = vector.load %arg3[%c0_6, %c0_7, %c0_8] : memref<1x4x16xf32, #tpu.memory_space<vmem>>, vector<1x4x16xf32>
    %5 = vector.shape_cast %4 : vector<1x4x16xf32> to vector<4x16xf32>
    %cst = arith.constant dense<0.000000e+00> : vector<128x4xf32>
    %6 = tpu.matmul %1, %3, %cst {dimension_numbers = #tpu.dot_dimension_numbers<[1], [1], [0], [0], [0, 0, 1, 0], [], []>} : vector<128x16xf32>, vector<4x16xf32>, vector<128x4xf32> -> vector<128x4xf32>
    %7 = vector.shape_cast %6 : vector<128x4xf32> to vector<8x16x4xf32>
    %8 = vector.shape_cast %5 : vector<4x16xf32> to vector<1x4x16xf32>
    %9 = vector.shape_cast %8 : vector<1x4x16xf32> to vector<1x4x16xf32>
    %10 = vector.broadcast %9 : vector<1x4x16xf32> to vector<8x4x16xf32>
    "tpu.trace_start"() <{level = 10 : i32, message = "cph,chq->cpq"}> : () -> ()
    %cst_9 = arith.constant dense<0.000000e+00> : vector<8x4x4xf32>
    %11 = tpu.matmul %10, %7, %cst_9 {dimension_numbers = #tpu.dot_dimension_numbers<[2], [1], [1], [2], [0, 0, 0, 1, 1, 2], [0], [0]>} : vector<8x4x16xf32>, vector<8x16x4xf32>, vector<8x4x4xf32> -> vector<8x4x4xf32>
    "tpu.trace_stop"() : () -> ()
    %c0_10 = arith.constant 0 : index
    %c0_11 = arith.constant 0 : index
    %c0_12 = arith.constant 0 : index
    %c0_13 = arith.constant 0 : index
    %12 = vector.load %arg6[%c0_10, %c0_11, %c0_12, %c0_13] : memref<1x8x4x4xf32, #tpu.memory_space<vmem>>, vector<1x8x4x4xf32>
    %13 = vector.shape_cast %12 : vector<1x8x4x4xf32> to vector<8x4x4xf32>
    %14 = vector.shape_cast %11 : vector<8x4x4xf32> to vector<1x8x4x4xf32>
    tpu.vector_store %arg6[%c0_10, %c0_11, %c0_12, %c0_13], %14 {strides = array<i32>} : memref<1x8x4x4xf32, #tpu.memory_space<vmem>>, vector<1x8x4x4xf32>,
    return
  }
  func.func @transform_0(%arg0: i32, %arg1: i32, %arg2: memref<3xi32, #tpu.memory_space<smem>>) -> (i32, i32, i32) {
    %c0_i32 = arith.constant 0 : i32
    %c0_i32_0 = arith.constant 0 : i32
    %c0_i32_1 = arith.constant 0 : i32
    return %arg0, %c0_i32, %c0_i32_0 : i32, i32, i32
  }
  func.func @transform_1(%arg0: i32, %arg1: i32, %arg2: memref<3xi32, #tpu.memory_space<smem>>) -> (i32, i32, i32) {
    %c0_i32 = arith.constant 0 : i32
    %c0_i32_0 = arith.constant 0 : i32
    %c0_i32_1 = arith.constant 0 : i32
    return %arg0, %c0_i32, %c0_i32_0 : i32, i32, i32
  }
  func.func @transform_2(%arg0: i32, %arg1: i32, %arg2: memref<3xi32, #tpu.memory_space<smem>>) -> (i32, i32, i32, i32) {
    %0 = arith.index_cast %arg0 : i32 to index
    %1 = memref.load %arg2[%0] : memref<3xi32, #tpu.memory_space<smem>>
    %c0_i32 = arith.constant 0 : i32
    %c0_i32_0 = arith.constant 0 : i32
    %c0_i32_1 = arith.constant 0 : i32
    return %1, %arg1, %c0_i32, %c0_i32_0 : i32, i32, i32, i32
  }
  func.func @transform_3(%arg0: i32, %arg1: i32, %arg2: memref<3xi32, #tpu.memory_space<smem>>) -> (i32, i32, i32, i32) {
    %c0_i32 = arith.constant 0 : i32
    %c0_i32_0 = arith.constant 0 : i32
    %c0_i32_1 = arith.constant 0 : i32
    return %arg0, %arg1, %c0_i32, %c0_i32_0 : i32, i32, i32, i32
  }
}

</mosaic_0001>

<bundles_post_ra>
// kernel: tpu_custom_call.1
= control target key start
LH: loop header
LB: loop body
LE: loop exit
PB: predicated region body
PF: predicated region fallthrough
CT: control target
= control target key end

     0   :  { %s1547_s0 = inlined_call_operand.vmem [shape: s32[3], index: 0, kind: input, shape index: {}]   ;;  %s1548_s1 = inlined_call_operand.vmem [shape: f32[3,4,16], index: 1, kind: input, shape index: {}]   ;;  %s1549_s2 = inlined_call_operand.vmem [shape: f32[3,4,16], index: 2, kind: input, shape index: {}]   ;;  %s1550_s3 = inlined_call_operand.vmem [shape: f32[2,1,128,16], index: 3, kind: input, shape index: {}]   ;;  %s1551_s4 = inlined_call_operand.vmem [shape: f32[3,8,4,4], index: 4, kind: output, shape index: {}]  }
   0x1   :  { %s9_s17 = sshll.u32 %s1547_s0, 4  ;;  %s10_s17 = int_to_ptr.vmem [resolvable:$true] %s9_s17 }
   0x2   :  { %s1347_s18 = scalar_lea.vmem %s10_s17, 16  ;;  %p1352_p1 = scmp.lt.s32.totalorder %s10_s17, %s10_s17 }
   0x3   :  { %p1348_p0 = scmp.ne.s32.totalorder %s10_s17, %s1347_s18  ;;  %p1353_p2 = scmp.lt.s32.totalorder %s1347_s18, %s1347_s18 }
   0x5   :  { %p1354_p3 = por %p1353_p2, %p1352_p1 }
   0x7   :  { %p1355_p4 = pnand %p1354_p3, %p1348_p0 }
   0x9   :  { %1358 = shalt.err (!%p1355_p4)  }
   0xa   :  { %s1385_s19 = smov [#allocation3]  }
   0xb   :  { %12 = dma.vmem_to_smem %s10_s17, 16, %s1385_s19, [#allocation2] }
   0xc   :  { %1371 = dma.done.wait [#allocation2], 16 }
   0xd   :  { %1372 = vsyncadd [#allocation2], 4294967280 }
   0xe   :  { %14 = sfence }
   0xf   :  { %s1416_s20 = smov 0   ;;  %s1418_s21 = smov 0  }
  0x10   :  { %s1420_s22 = smov 0  }
  0x11 LB: > { %s32_s0 = sadd.s32 1, %s1379_s21  ;;  %p1161_p5 = scmp.ge.s32.totalorder %s1383_s22, 1  ;;  %s1383_s22 = sphi %s1420_s22, %s20_s22   ;;  %s1379_s21 = sphi %s1418_s21, %s1553_s21   ;;  %s1375_s20 = sphi %s1416_s20, %s1552_s20  }
  0x12   : > { %p34_p6 = scmp.ge.s32.totalorder %s32_s0, 3  ;;  %p186_p7 = scmp.lt.s32.totalorder %s1383_s22, 4 }
  0x14   : > { %s1555_s0 = smov (%p34_p6, %s32_s0), 0  ;;  %p187_p8 = pnand %p1161_p5, %p186_p7 }
  0x15   : > { %p227_p9 = scmp.lt.s32.totalorder (!%p187_p8), %s1375_s20, 2  ;;  %s235_s23 = sld [smem:[#allocation3 + %s1375_s20]] (!%p187_p8) }
  0x16   : > { %190 = sbr.rel (%p187_p8) target bundleno = 454 (0x1c6), region = 32 }
  0x1b   : > { %s1557_s20 = smov (!%p227_p9, %s1375_s20), 2  ;;  %vm274_vm0 = vcmask 130048   ;;  %p236_p10 = scmp.lt.s32.totalorder %s235_s23, 1  ;;  %v1386_v17 = vmov 0.0   ;;  %vm1387_vm1 = vmmov 0   ;;  %vm1034_vm2 = vcmask 27648  }
  0x1c   : > { %s1162_s24 = sshll.u32 %s1557_s20, 2  ;;  %1264 = vmatprep.subr.mxu1 %v1386_v17  ;;  %1268 = vmatprep.mubr.msk.f32.mxu1 %vm1387_vm1, %v1386_v17  ;;  %s1196_s9 = sshll.u32 %s1557_s20, 5 }
  0x1d   : > { %s234_s27 = scalar_lea.vmem %s1549_s2, %s1162_s24  ;;  %s1559_s23 = smov (!%p236_p10, %s235_s23), 1 }
  0x1e   : > { %v272_v0 = vld [vmem:[%s234_s27] sm:$0xf]  ;;  %s1195_s28 = sshll.u32 %s1559_s23, 7  ;;  %s230_s8 = scalar_lea.vmem %s1548_s1, %s1162_s24 }
  0x1f   : > { %1238 = vmatprep.subr.msk.mxu0 %vm274_vm0, %v272_v0  ;;  %s1447_s5 = scalar_lea.vmem %s1550_s3, %s1195_s28  ;;  %v273_v19 = vld [vmem:[%s230_s8] sm:$0xf]  ;;  %s254_s12 = scalar_lea.vmem %s1551_s4, %s1196_s9 }
  0x20   : > { %1239 = vmatpush3.xpose.msk.msra.mxu0 %vm274_vm0, %v272_v0  ;;  %v256_v1 = vld [vmem:[%s1447_s5] sm:$0xff]  ;;  %v257_v2 = vld [vmem:[%s1447_s5 + $0x8] sm:$0xff]  ;;  %v258_v3 = vld [vmem:[%s1447_s5 + $0x10] sm:$0xff] }
  0x21   : > { %1240 = vmatprep.mubr.msk.f32.mxu0 %vm274_vm0, %v256_v1  ;;  %v259_v4 = vld [vmem:[%s1447_s5 + $0x18] sm:$0xff]  ;;  %v260_v5 = vld [vmem:[%s1447_s5 + $0x20] sm:$0xff]  ;;  %v261_v6 = vld [vmem:[%s1447_s5 + $0x28] sm:$0xff] }
  0x22   : > { %v262_v7 = vld [vmem:[%s1447_s5 + $0x30] sm:$0xff]  ;;  %v263_v8 = vld [vmem:[%s1447_s5 + $0x38] sm:$0xff]  ;;  %v264_v9 = vld [vmem:[%s1447_s5 + $0x40] sm:$0xff] }
  0x23   : > { %1241 = vmatmul.mubr.msk.f32.vlgmr.msra.gmra.mxu0 %vm274_vm0, %v257_v2  ;;  %v265_v10 = vld [vmem:[%s1447_s5 + $0x48] sm:$0xff]  ;;  %v266_v11 = vld [vmem:[%s1447_s5 + $0x50] sm:$0xff]  ;;  %v267_v12 = vld [vmem:[%s1447_s5 + $0x58] sm:$0xff] }
  0x24   : > { %1243 = vmatprep.mubr.msk.f32.mxu0 %vm274_vm0, %v258_v3  ;;  %v268_v13 = vld [vmem:[%s1447_s5 + $0x60] sm:$0xff]  ;;  %v269_v14 = vld [vmem:[%s1447_s5 + $0x68] sm:$0xff]  ;;  %v270_v15 = vld [vmem:[%s1447_s5 + $0x70] sm:$0xff] }
  0x25   : > { %v271_v16 = vld [vmem:[%s1447_s5 + $0x78] sm:$0xff] }
  0x27   : > { %1244 = vmatmul.mubr.msk.f32.gmra.mxu0 %vm274_vm0, %v259_v4 }
  0x28   : > { %1246 = vmatprep.mubr.msk.f32.mxu0 %vm274_vm0, %v260_v5 }
  0x2b   : > { %1247 = vmatmul.mubr.msk.f32.gmra.mxu0 %vm274_vm0, %v261_v6 }
  0x2c   : > { %1249 = vmatprep.mubr.msk.f32.mxu0 %vm274_vm0, %v262_v7 }
  0x2f   : > { %1250 = vmatmul.mubr.msk.f32.gmra.mxu0 %vm274_vm0, %v263_v8 }
  0x30   : > { %1252 = vmatprep.mubr.msk.f32.mxu0 %vm274_vm0, %v264_v9 }
  0x33   : > { %1253 = vmatmul.mubr.msk.f32.gmra.mxu0 %vm274_vm0, %v265_v10 }
  0x34   : > { %1255 = vmatprep.mubr.msk.f32.mxu0 %vm274_vm0, %v266_v11 }
  0x37   : > { %1256 = vmatmul.mubr.msk.f32.gmra.mxu0 %vm274_vm0, %v267_v12 }
  0x38   : > { %1258 = vmatprep.mubr.msk.f32.mxu0 %vm274_vm0, %v268_v13 }
  0x3b   : > { %1259 = vmatmul.mubr.msk.f32.gmra.mxu0 %vm274_vm0, %v269_v14 }
  0x3c   : > { %1261 = vmatprep.mubr.msk.f32.mxu0 %vm274_vm0, %v270_v15 }
  0x3f   : > { %1262 = vmatmul.mubr.msk.f32.gmra.mxu0 %vm274_vm0, %v271_v16 }
  0xe3   : > { %v1242_v18 = vpop.f32.mrf.mxu0 }
  0xe4   : > { %1265 = vmatpush3.msra.mxu1 %v1242_v18 }
  0xe5   : > { %v392_v20 = vpop.f32.mrf.mxu0  ;;  %1266 = vmatprep.subr.mxu1 %v1386_v17 }
  0xe6   : > { %1267 = vmatpush3.msra.mxu1 %v392_v20 }
  0xe7   : > { %v1245_v21 = vpop.f32.mrf.mxu0  ;;  %1269 = vmatmul.mubr.msk.f32.vlgmr.msra.gmra.mxu1 %vm274_vm0, %v273_v19  ;;  %1271 = vmatprep.subr.mxu1 %v1386_v17 }
  0xe8   : > { %1272 = vmatpush3.msra.mxu1 %v1245_v21  ;;  %1275 = vmatprep.mubr.msk.f32.mxu1 %vm1387_vm1, %v1386_v17 }
  0xe9   : > { %v402_v22 = vpop.f32.mrf.mxu0  ;;  %1273 = vmatprep.subr.mxu1 %v1386_v17 }
  0xea   : > { %1274 = vmatpush3.msra.mxu1 %v402_v22 }
  0xeb   : > { %v1248_v23 = vpop.f32.mrf.mxu0  ;;  %1276 = vmatmul.mubr.msk.f32.vlgmr.msra.gmra.mxu1 %vm274_vm0, %v273_v19  ;;  %1278 = vmatprep.subr.mxu1 %v1386_v17 }
  0xec   : > { %1279 = vmatpush3.msra.mxu1 %v1248_v23  ;;  %1282 = vmatprep.mubr.msk.f32.mxu1 %vm1387_vm1, %v1386_v17 }
  0xed   : > { %v412_v24 = vpop.f32.mrf.mxu0  ;;  %1280 = vmatprep.subr.mxu1 %v1386_v17 }
  0xee   : > { %1281 = vmatpush3.msra.mxu1 %v412_v24 }
  0xef   : > { %v1251_v25 = vpop.f32.mrf.mxu0  ;;  %1283 = vmatmul.mubr.msk.f32.vlgmr.msra.gmra.mxu1 %vm274_vm0, %v273_v19  ;;  %1285 = vmatprep.subr.mxu1 %v1386_v17 }
  0xf0   : > { %1286 = vmatpush3.msra.mxu1 %v1251_v25  ;;  %1289 = vmatprep.mubr.msk.f32.mxu1 %vm1387_vm1, %v1386_v17 }
  0xf1   : > { %v422_v26 = vpop.f32.mrf.mxu0  ;;  %1287 = vmatprep.subr.mxu1 %v1386_v17 }
  0xf2   : > { %1288 = vmatpush3.msra.mxu1 %v422_v26 }
  0xf3   : > { %v1254_v27 = vpop.f32.mrf.mxu0  ;;  %1290 = vmatmul.mubr.msk.f32.vlgmr.msra.gmra.mxu1 %vm274_vm0, %v273_v19  ;;  %1292 = vmatprep.subr.mxu1 %v1386_v17 }
  0xf4   : > { %1293 = vmatpush3.msra.mxu1 %v1254_v27  ;;  %1296 = vmatprep.mubr.msk.f32.mxu1 %vm1387_vm1, %v1386_v17 }
  0xf5   : > { %v432_v28 = vpop.f32.mrf.mxu0  ;;  %1294 = vmatprep.subr.mxu1 %v1386_v17 }
  0xf6   : > { %1295 = vmatpush3.msra.mxu1 %v432_v28 }
  0xf7   : > { %v1257_v29 = vpop.f32.mrf.mxu0  ;;  %1297 = vmatmul.mubr.msk.f32.vlgmr.msra.gmra.mxu1 %vm274_vm0, %v273_v19  ;;  %1299 = vmatprep.subr.mxu1 %v1386_v17 }
  0xf8   : > { %1300 = vmatpush3.msra.mxu1 %v1257_v29  ;;  %1303 = vmatprep.mubr.msk.f32.mxu1 %vm1387_vm1, %v1386_v17 }
  0xf9   : > { %v442_v30 = vpop.f32.mrf.mxu0  ;;  %1301 = vmatprep.subr.mxu1 %v1386_v17 }
  0xfa   : > { %1302 = vmatpush3.msra.mxu1 %v442_v30 }
  0xfb   : > { %v1260_v31 = vpop.f32.mrf.mxu0  ;;  %1304 = vmatmul.mubr.msk.f32.vlgmr.msra.gmra.mxu1 %vm274_vm0, %v273_v19  ;;  %1306 = vmatprep.subr.mxu1 %v1386_v17 }
  0xfc   : > { %1307 = vmatpush3.msra.mxu1 %v1260_v31  ;;  %1310 = vmatprep.mubr.msk.f32.mxu1 %vm1387_vm1, %v1386_v17 }
  0xfd   : > { %v452_v32 = vpop.f32.mrf.mxu0  ;;  %1308 = vmatprep.subr.mxu1 %v1386_v17 }
  0xfe   : > { %1309 = vmatpush3.msra.mxu1 %v452_v32 }
  0xff   : > { %v1263_v33 = vpop.f32.mrf.mxu0  ;;  %1311 = vmatmul.mubr.msk.f32.vlgmr.msra.gmra.mxu1 %vm274_vm0, %v273_v19  ;;  %1313 = vmatprep.subr.mxu1 %v1386_v17 }
 0x100   : > { %1314 = vmatpush3.msra.mxu1 %v1263_v33  ;;  %1317 = vmatprep.mubr.msk.f32.mxu1 %vm1387_vm1, %v1386_v17 }
 0x101   : > { %v462_v34 = vpop.f32.mrf.mxu0  ;;  %1315 = vmatprep.subr.mxu1 %v1386_v17 }
 0x102   : > { %1316 = vmatpush3.msra.mxu1 %v462_v34 }
 0x103   : > { %1318 = vmatmul.mubr.msk.f32.vlgmr.msra.gmra.mxu1 %vm274_vm0, %v273_v19 }
 0x1a7   : > { %v540_v35 = vpop.f32.mrf.mxu1 }
 0x1a8   : > { %1035 = vst.msk [vmem:[%s254_s12] sm:$0xf] %vm1034_vm2, %v540_v35 }
 0x1a9   : > { %v1270_v36 = vpop.f32.mrf.mxu1 }
 0x1ab   : > { %v610_v37 = vpop.f32.mrf.mxu1 }
 0x1ac   : > { %1036 = vst.msk [vmem:[%s254_s12 + $0x4] sm:$0xf] %vm1034_vm2, %v610_v37 }
 0x1ad   : > { %v1277_v38 = vpop.f32.mrf.mxu1 }
 0x1af   : > { %v680_v39 = vpop.f32.mrf.mxu1 }
 0x1b0   : > { %1037 = vst.msk [vmem:[%s254_s12 + $0x8] sm:$0xf] %vm1034_vm2, %v680_v39 }
 0x1b1   : > { %v1284_v40 = vpop.f32.mrf.mxu1 }
 0x1b3   : > { %v750_v41 = vpop.f32.mrf.mxu1 }
 0x1b4   : > { %1038 = vst.msk [vmem:[%s254_s12 + $0xc] sm:$0xf] %vm1034_vm2, %v750_v41 }
 0x1b5   : > { %v1291_v42 = vpop.f32.mrf.mxu1 }
 0x1b7   : > { %v820_v43 = vpop.f32.mrf.mxu1 }
 0x1b8   : > { %1039 = vst.msk [vmem:[%s254_s12 + $0x10] sm:$0xf] %vm1034_vm2, %v820_v43 }
 0x1b9   : > { %v1298_v44 = vpop.f32.mrf.mxu1 }
 0x1bb   : > { %v890_v45 = vpop.f32.mrf.mxu1 }
 0x1bc   : > { %1040 = vst.msk [vmem:[%s254_s12 + $0x14] sm:$0xf] %vm1034_vm2, %v890_v45 }
 0x1bd   : > { %v1305_v46 = vpop.f32.mrf.mxu1 }
 0x1bf   : > { %v960_v47 = vpop.f32.mrf.mxu1 }
 0x1c0   : > { %1041 = vst.msk [vmem:[%s254_s12 + $0x18] sm:$0xf] %vm1034_vm2, %v960_v47 }
 0x1c1   : > { %v1312_v48 = vpop.f32.mrf.mxu1 }
 0x1c3   : > { %v1030_v49 = vpop.f32.mrf.mxu1 }
 0x1c4   : > { %1042 = vst.msk [vmem:[%s254_s12 + $0x1c] sm:$0xf] %vm1034_vm2, %v1030_v49 }
 0x1c5   : > { %v1319_v50 = vpop.f32.mrf.mxu1 }
 0x1c6 PF: > { %s20_s22 = sadd.s32 1, %s1383_s22   ;;  %s1552_s20 = smov %s1379_s21 }
 0x1c7   : > { %p17_p11 = scmp.ge.s32.totalorder %s20_s22, 5   ;;  %s1553_s21 = smov %s1555_s0 }
 0x1c9   :  { %19 = sbr.rel (!%p17_p11) target bundleno = 17 (0x11), region = 68 }

</bundles_post_ra>
